<compile_context>
chip_gen: v5e
topology: v5e:2x2
jax: 0.10.0
libtpu: 0.0.40
codegen_flags: <defaults>
</compile_context>

<pallas_src>
import jax
import jax.numpy as jnp
from jax.experimental import pallas as pl
from jax.experimental.pallas import tpu as pltpu

EPS = 1e-5  # nn.LayerNorm default eps


def _round_up(n, m):
    return ((n + m - 1) // m) * m


def _vmem_cap_bytes():
    """Per-core VMEM budget with ~12.5% headroom for compiler-internal scratch."""
    cap = 64 << 20  # conservative default = v7x per-TensorCore physical VMEM
    try:
        info = pltpu.get_tpu_info()
        cap = int(getattr(info, "vmem_capacity_bytes", cap))
    except Exception:
        pass
    # 64 MiB -> 56 MiB (v7x), 128 MiB -> 112 MiB (v5e / v6e)
    return max(cap - cap // 8, 32 << 20)


def _pick_tile_n(h_pad, target):
    """Largest divisor of h_pad <= target, preferring 256-granular tiles
    (matches the 2x256x256 MXU on v6e/v7x), then 128-granular (lane-dense)."""
    if h_pad <= target:
        return h_pad
    for gran in (256, 128):
        t = (min(target, h_pad) // gran) * gran
        while t >= gran:
            if h_pad % t == 0:
                return t
            t -= gran
    return h_pad


def fold_prenorm_linear_params(gamma, beta, w, bias):
    """Fold the LayerNorm affine into the fused Linear (algebraically identical):

        (xn * gamma + beta) @ W + b == xn @ (gamma[:, None] * W) + (beta @ W + b)

    Call ONCE when weights change (NOT per forward): the fold reads/writes the
    full (D, H) weight and must not sit on the per-step path.  H is padded up to
    a multiple of 128 so output stores are lane-dense/unmasked.

    Returns (w_eff bf16 (D, H_pad), bias_eff f32 (1, H_pad), H).
    """
    D, H = w.shape
    h_pad = _round_up(H, 128)
    w32 = w.astype(jnp.float32)
    w_eff = gamma.astype(jnp.float32)[:, None] * w32
    bias_eff = beta.astype(jnp.float32) @ w32 + bias.astype(jnp.float32)
    if h_pad != H:
        w_eff = jnp.pad(w_eff, ((0, 0), (0, h_pad - H)))
        bias_eff = jnp.pad(bias_eff, (0, h_pad - H))
    return w_eff.astype(jnp.bfloat16), bias_eff.reshape(1, h_pad), H


def _layernorm_f32(x_f32):
    mean = jnp.mean(x_f32, axis=-1, keepdims=True)
    xc = x_f32 - mean
    var = jnp.mean(xc * xc, axis=-1, keepdims=True)  # biased, like PyTorch
    return xc * jax.lax.rsqrt(var + EPS)


def _prenorm_linear_scratch_kernel(x_ref, w_ref, bias_ref, o_ref, y_ref):
    """Grid (i, j): row tile i, H tile j (j innermost).

    LayerNorm is computed ONCE per row tile into the bf16 scratch `y_ref` at
    j == 0 and reused for every H tile, so per-j work is MXU-only.

    CORRECTNESS NOTE: this is only valid because j (grid axis 1) is the
    innermost, sequentially-executed ("arbitrary") axis on a single core.
    Marking j "parallel" or reordering the grid would read stale / uninitialized
    y_ref for j > 0.
    """
    @pl.when(pl.program_id(1) == 0)
    def _():
        y_ref[...] = _layernorm_f32(x_ref[...].astype(jnp.float32)).astype(y_ref.dtype)

    out = jnp.dot(y_ref[...], w_ref[...], preferred_element_type=jnp.float32)
    o_ref[...] = (out + bias_ref[...]).astype(o_ref.dtype)


def _prenorm_linear_recompute_kernel(x_ref, w_ref, bias_ref, o_ref):
    """LN recomputed per (i, j): no cross-j dependence, so BOTH grid axes can be
    "parallel" (v7x megacore) -- used when there are too few row tiles to keep
    two TensorCores busy.  LN is cheap VPU work hidden under the MXU."""
    y = _layernorm_f32(x_ref[...].astype(jnp.float32)).astype(w_ref.dtype)
    out = jnp.dot(y, w_ref[...], preferred_element_type=jnp.float32)
    o_ref[...] = (out + bias_ref[...]).astype(o_ref.dtype)


def encoder_prenorm(x, folded_params, *, row_tile=512, n_tile=512, out_dtype=None):
    """x: (B, S, D). Returns fn(LayerNorm(x)) with fn = Linear(D, H).

    folded_params = fold_prenorm_linear_params(gamma, beta, w, bias)  (hoisted).
    """
    w_eff, bias_eff, H = folded_params
    B, S, D = x.shape
    h_pad = w_eff.shape[1]
    R = B * S
    out_dtype = x.dtype if out_dtype is None else jnp.dtype(out_dtype)
    out_bytes = jnp.dtype(out_dtype).itemsize

    # bf16 MXU operand: halves x HBM stream + x VMEM tile; LN math stays f32.
    x2 = x.reshape(R, D)
    if x2.dtype.itemsize > 2:
        x2 = x2.astype(jnp.bfloat16)
    xb = x2.dtype.itemsize

    # Row tile: the (D, tn) weight is re-streamed once per row tile, giving
    # ~2*tr FLOP/byte on the weight stream; tr=512 clears v6e's ridge point
    # (~714 FLOP/B) so the kernel is MXU-bound.  No wrapper-side pad of x:
    # the grid is cdiv(R, tr) and Pallas masks stores of a partial last tile
    # (rows are independent, so OOB garbage rows never reach HBM).
    tr = min(row_tile, _round_up(R, 8))
    tn = _pick_tile_n(h_pad, n_tile)

    cap = _vmem_cap_bytes()

    def vmem_estimate(tr_, tn_):
        return (2 * tr_ * D * xb             # x row tile (double-buffered)
                + 2 * D * tn_ * 2            # bf16 folded-weight tile
                + 2 * tn_ * 4                # folded-bias tile
                + 2 * tr_ * tn_ * out_bytes  # output tile
                + tr_ * D * 2)               # bf16 normalized-rows scratch

    # Keep the configuration inside the per-core VMEM budget (v7x: 64 MiB phys).
    while vmem_estimate(tr, tn) > cap and tr > 64:
        tr = max(64, _round_up(tr // 2, 8))
    vmem_limit = int(min(max(vmem_estimate(tr, tn) + (4 << 20), 16 << 20), cap))

    grid_rows = pl.cdiv(R, tr)
    grid_h = h_pad // tn

    # Few row tiles => only one of v7x's two cores would get work under
    # ("parallel", "arbitrary"); recompute the cheap LN per (i, j) instead and
    # mark both axes parallel.  Also used when grid_h == 1 (scratch buys nothing).
    use_scratch = grid_h > 1 and grid_rows >= 4

    cost = pl.CostEstimate(
        flops=2 * R * D * h_pad + 8 * R * D,
        transcendentals=R,                            # one rsqrt per row
        bytes_accessed=(R * D * xb                    # x read (once per row tile)
                        + grid_rows * D * h_pad * 2   # weight re-streamed per row tile
                        + R * h_pad * out_bytes),     # output writeback
    )

    in_specs = [
        pl.BlockSpec((tr, D), lambda i, j: (i, 0)),   # x rows (constant in j)
        pl.BlockSpec((D, tn), lambda i, j: (0, j)),   # folded weight (bf16)
        pl.BlockSpec((1, tn), lambda i, j: (0, j)),   # folded bias (f32)
    ]
    out_spec = pl.BlockSpec((tr, tn), lambda i, j: (i, j))
    out_shape = jax.ShapeDtypeStruct((R, h_pad), out_dtype)

    if use_scratch:
        out = pl.pallas_call(
            _prenorm_linear_scratch_kernel,
            out_shape=out_shape,
            grid_spec=pltpu.PrefetchScalarGridSpec(
                num_scalar_prefetch=0,
                grid=(grid_rows, grid_h),
                in_specs=in_specs,
                out_specs=out_spec,
                scratch_shapes=[pltpu.VMEM((tr, D), jnp.bfloat16)],
            ),
            compiler_params=pltpu.CompilerParams(
                # j MUST stay "arbitrary": the LN scratch is filled at j == 0.
                dimension_semantics=("parallel", "arbitrary"),
                vmem_limit_bytes=vmem_limit,
            ),
            cost_estimate=cost,
        )(x2, w_eff, bias_eff)
    else:
        out = pl.pallas_call(
            _prenorm_linear_recompute_kernel,
            out_shape=out_shape,
            grid_spec=pltpu.PrefetchScalarGridSpec(
                num_scalar_prefetch=0,
                grid=(grid_rows, grid_h),
                in_specs=in_specs,
                out_specs=out_spec,
            ),
            compiler_params=pltpu.CompilerParams(
                dimension_semantics=("parallel", "parallel"),
                vmem_limit_bytes=vmem_limit,
            ),
            cost_estimate=cost,
        )(x2, w_eff, bias_eff)

    if h_pad != H:
        out = out[:, :H]
    return out.reshape(B, S, H)


def _reference(x, gamma, beta, w, bias):
    mean = jnp.mean(x, axis=-1, keepdims=True)
    var = jnp.mean((x - mean) ** 2, axis=-1, keepdims=True)
    xn = (x - mean) * jax.lax.rsqrt(var + EPS)
    y = xn * gamma + beta
    return jnp.einsum("bsd,dh->bsh", y, w) + bias


if __name__ == "__main__":
    key = jax.random.PRNGKey(0)

    def run_case(B, S, D, H, case_key):
        kx, kw, kb, kg, kbeta = jax.random.split(case_key, 5)
        x = jax.random.normal(kx, (B, S, D), dtype=jnp.float32)
        # LayerNorm params perturbed from PyTorch's default init so the
        # affine-fold path is actually exercised.
        gamma = 1.0 + 0.1 * jax.random.normal(kg, (D,), dtype=jnp.float32)
        beta = 0.1 * jax.random.normal(kbeta, (D,), dtype=jnp.float32)
        # fn = Linear(D, H) params, deterministic.
        w = jax.random.normal(kw, (D, H), dtype=jnp.float32) * 0.05
        bias = jax.random.normal(kb, (H,), dtype=jnp.float32) * 0.01

        folded = fold_prenorm_linear_params(gamma, beta, w, bias)  # hoisted: once
        out = jax.block_until_ready(encoder_prenorm(x, folded))
        ref = _reference(x, gamma, beta, w, bias)
        assert out.shape == (B, S, H)
        # bf16 MXU operands (x, normalized rows, folded weight) => loose tolerance.
        assert jnp.allclose(out, ref, atol=2e-2, rtol=2e-2), \
            f"mismatch vs reference for (B,S,D,H)=({B},{S},{D},{H})"

    k1, k2 = jax.random.split(key)
    # Small shapes consistent with the module (recompute / megacore-friendly path).
    run_case(2, 8, 32, 32, k1)
    # Larger case exercising the LN-once-per-row-tile scratch + multi-H-tile path.
    run_case(4, 512, 64, 1024, k2)
    print("KERNEL_OK")
</pallas_src>

<mosaic_0001>
module attributes {stable_mosaic.version = 11 : i64} {
  func.func @_prenorm_linear_recompute_kernel(%arg0: i32, %arg1: i32, %arg2: memref<16x32xbf16, #tpu.memory_space<vmem>>, %arg3: memref<32x128xbf16, #tpu.memory_space<vmem>>, %arg4: memref<1x128xf32, #tpu.memory_space<vmem>>, %arg5: memref<16x128xf32, #tpu.memory_space<vmem>>) attributes {dimension_semantics = [#tpu.dimension_semantics<parallel>, #tpu.dimension_semantics<parallel>], iteration_bounds = array<i64: 1, 1>, scalar_prefetch = 0 : i64, scratch_operands = 0 : i64, tpu.core_type = #tpu.core_type<tc>, window_params = [{transform_indices = @transform_0, window_bounds = array<i64: 16, 32>}, {transform_indices = @transform_1, window_bounds = array<i64: 32, 128>}, {transform_indices = @transform_2, window_bounds = array<i64: 1, 128>}, {transform_indices = @transform_3, window_bounds = array<i64: 16, 128>}]} {
    %c0 = arith.constant 0 : index
    %c0_0 = arith.constant 0 : index
    %0 = vector.load %arg2[%c0, %c0_0] : memref<16x32xbf16, #tpu.memory_space<vmem>>, vector<16x32xbf16>
    %1 = arith.extf %0 : vector<16x32xbf16> to vector<16x32xf32>
    %cst = arith.constant dense<0.000000e+00> : vector<16xf32>
    %2 = vector.multi_reduction <add>, %1, %cst [1] : vector<16x32xf32> to vector<16xf32>
    %3 = vector.shape_cast %2 : vector<16xf32> to vector<16x1xf32>
    %cst_1 = arith.constant 3.200000e+01 : f32
    %4 = vector.broadcast %cst_1 : f32 to vector<16x1xf32>
    %5 = arith.divf %3, %4 : vector<16x1xf32>
    %6 = vector.broadcast %5 : vector<16x1xf32> to vector<16x32xf32>
    %7 = arith.subf %1, %6 : vector<16x32xf32>
    %8 = arith.mulf %7, %7 : vector<16x32xf32>
    %cst_2 = arith.constant dense<0.000000e+00> : vector<16xf32>
    %9 = vector.multi_reduction <add>, %8, %cst_2 [1] : vector<16x32xf32> to vector<16xf32>
    %10 = vector.shape_cast %9 : vector<16xf32> to vector<16x1xf32>
    %cst_3 = arith.constant 3.200000e+01 : f32
    %11 = vector.broadcast %cst_3 : f32 to vector<16x1xf32>
    %12 = arith.divf %10, %11 : vector<16x1xf32>
    %cst_4 = arith.constant 9.99999974E-6 : f32
    %13 = vector.broadcast %cst_4 : f32 to vector<16x1xf32>
    %14 = arith.addf %12, %13 : vector<16x1xf32>
    %15 = math.rsqrt %14 : vector<16x1xf32>
    %16 = vector.broadcast %15 : vector<16x1xf32> to vector<16x32xf32>
    %17 = arith.mulf %7, %16 : vector<16x32xf32>
    %18 = arith.truncf %17 : vector<16x32xf32> to vector<16x32xbf16>
    %c0_5 = arith.constant 0 : index
    %c0_6 = arith.constant 0 : index
    %19 = vector.load %arg3[%c0_5, %c0_6] : memref<32x128xbf16, #tpu.memory_space<vmem>>, vector<32x128xbf16>
    %cst_7 = arith.constant dense<0.000000e+00> : vector<16x128xf32>
    %20 = tpu.matmul %18, %19, %cst_7 {dimension_numbers = #tpu.dot_dimension_numbers<[1], [0], [0], [1], [0, 0, 1, 1], [], []>} : vector<16x32xbf16>, vector<32x128xbf16>, vector<16x128xf32> -> vector<16x128xf32>
    %c0_8 = arith.constant 0 : index
    %c0_9 = arith.constant 0 : index
    %21 = vector.load %arg4[%c0_8, %c0_9] : memref<1x128xf32, #tpu.memory_space<vmem>>, vector<1x128xf32>
    %22 = vector.broadcast %21 : vector<1x128xf32> to vector<16x128xf32>
    %23 = arith.addf %20, %22 : vector<16x128xf32>
    %c0_10 = arith.constant 0 : index
    %c0_11 = arith.constant 0 : index
    %24 = vector.load %arg5[%c0_10, %c0_11] : memref<16x128xf32, #tpu.memory_space<vmem>>, vector<16x128xf32>
    tpu.vector_store %arg5[%c0_10, %c0_11], %23 {strides = array<i32>} : memref<16x128xf32, #tpu.memory_space<vmem>>, vector<16x128xf32>,
    return
  }
  func.func @transform_0(%arg0: i32, %arg1: i32) -> (i32, i32) {
    %c0_i32 = arith.constant 0 : i32
    %c0_i32_0 = arith.constant 0 : i32
    return %arg0, %c0_i32 : i32, i32
  }
  func.func @transform_1(%arg0: i32, %arg1: i32) -> (i32, i32) {
    %c0_i32 = arith.constant 0 : i32
    %c0_i32_0 = arith.constant 0 : i32
    return %c0_i32, %arg1 : i32, i32
  }
  func.func @transform_2(%arg0: i32, %arg1: i32) -> (i32, i32) {
    %c0_i32 = arith.constant 0 : i32
    %c0_i32_0 = arith.constant 0 : i32
    return %c0_i32, %arg1 : i32, i32
  }
  func.func @transform_3(%arg0: i32, %arg1: i32) -> (i32, i32) {
    %c0_i32 = arith.constant 0 : i32
    return %arg0, %arg1 : i32, i32
  }
}

</mosaic_0001>

<bundles_post_ra>
// kernel: tpu_custom_call.1
= control target key start
LH: loop header
LB: loop body
LE: loop exit
PB: predicated region body
PF: predicated region fallthrough
CT: control target
= control target key end

     0   :  { %8 = vsyncpa [#allocation3], 0  ;;  %s317_s0 = inlined_call_operand.hbm [shape: bf16[16,32], index: 0, kind: input, shape index: {}]   ;;  %s318_s1 = inlined_call_operand.hbm [shape: bf16[32,128], index: 1, kind: input, shape index: {}]   ;;  %s319_s2 = inlined_call_operand.vmem [shape: f32[1,128], index: 2, kind: input, shape index: {}]   ;;  %s320_s3 = inlined_call_operand.hbm [shape: f32[16,128], index: 3, kind: output, shape index: {}]  }
   0x1   :  { %9 = vsyncpa [#allocation6], 0 }
   0x2   :  { %10 = vsyncpa [#allocation4], 0  ;;  %s15_s14 = sshll.u32 %s317_s0, 4  ;;  %s272_s15 = smov [#allocation2]   ;;  %s16_s14 = int_to_ptr.hbm [resolvable:$true] %s15_s14 }
   0x3   :  { %s17_s16 = sshll.u32 %s272_s15, 4  ;;  %s28_s19 = sshll.u32 %s318_s1, 4  ;;  %s18_s16 = int_to_ptr.vmem [resolvable:$true] %s17_s16  ;;  %s29_s19 = int_to_ptr.hbm [resolvable:$true] %s28_s19 }
   0x4   :  { %s273_s20 = smov 64   ;;  %s274_s21 = smov 4  }
   0x5   :  { %23 = dma.hbm_to_vmem [thread:$0]  %s16_s14, 128, %s18_s16, [#allocation3], %s273_s20, %s273_s20, %s274_s21  }
   0x6   :  { %s275_s22 = smov [#allocation5]  }
   0x7   :  { %s30_s23 = sshll.u32 %s275_s22, 4  ;;  %s31_s23 = int_to_ptr.vmem [resolvable:$true] %s30_s23 }
   0x8   :  { %36 = dma.hbm_to_vmem [thread:$0]  %s29_s19, 256, %s31_s23, [#allocation6], %s273_s20, %s273_s20, %s274_s21  }
   0x9   :  { %266 = dma.done.wait [#allocation3], 128  }
   0xa   :  { %267 = vsyncadd [#allocation3], 4294967168 }
   0xb   :  { %268 = dma.done.wait [#allocation6], 256  }
   0xc   :  { %269 = vsyncadd [#allocation6], 4294967040  ;;  %v176_v0 = vld [vmem:[#allocation2] sm:$0xff]   ;;  %vm52_vm0 = vcmask 261120   ;;  %v276_v5 = vmov 32.0   ;;  %v174_v22 = vld [vmem:[#allocation5 + $0x8] sm:$0xff] }
   0xd   :  { %v177_v1 = vunpack.c.l.bf16 %v176_v0  ;;  %v178_v3 = vunpack.c.h.bf16 %v176_v0  ;;  %188 = vrcp.f32 %v276_v5  ;;  %134 = vmatpush.bf16.msra.mxu0 %v174_v22  ;;  %v173_v23 = vld [vmem:[#allocation5] sm:$0xff]  ;;  %v187_v47 = vld [vmem:[%s319_s2] ss:$0 sm:$0xff]  ;;  %s277_s24 = smov [#allocation7]   ;;  %s150_s28 = sshll.u32 %s320_s3, 4  ;;  %s151_s28 = int_to_ptr.hbm [resolvable:$true] %s150_s28 }
   0xe   :  { %s148_s25 = sshll.u32 %s277_s24, 4  ;;  %s278_s29 = smov 128   ;;  %s149_s25 = int_to_ptr.vmem [resolvable:$true] %s148_s25 }
   0xf   :  { %v53_v2 = vsel %vm52_vm0, %v177_v1, 0.0  ;;  %v56_v4 = vsel %vm52_vm0, %v178_v3, 0.0  ;;  %s279_s30 = smov 8  }
  0x10   :  { %54 = vadd.xlane.f32.xlu0 %v53_v2 }
  0x11   :  { %135 = vmatpush.bf16.msra.mxu0 %v173_v23 }
  0x13   :  { %v189_v6 = vpop.eup %188 }
  0x14   :  { %v60_v7 = vmul.f32 32.0, %v189_v6  ;;  %vm64_vm1 = vweird.f32 %v189_v6 }
  0x16   :  { %v61_v8 = vsub.f32 1.0, %v60_v7 }
  0x18   :  { %57 = vadd.xlane.f32.xlu0 %v56_v4  ;;  %v62_v9 = vmul.f32 %v189_v6, %v61_v8 }
  0x1a   :  { %v63_v10 = vadd.f32 %v189_v6, %v62_v9 }
  0x1c   :  { %v65_v11 = vsel %vm64_vm1, %v189_v6, %v63_v10 }
  0x83   :  { %v55_v12 = vpop.xlane.xlu0 %54 }
  0x84   :  { %v66_v13 = vmul.f32 %v65_v11, %v55_v12 }
  0x86   :  { %v68_v14 = vsub.f32 %v177_v1, %v66_v13 }
  0x88   :  { %v70_v15 = vmul.f32 %v68_v14, %v68_v14 }
  0x8a   :  { %v72_v16 = vsel %vm52_vm0, %v70_v15, 0.0 }
  0x8b   :  { %73 = vadd.xlane.f32.xlu1 %v72_v16  ;;  %v58_v17 = vpop.xlane.xlu0 %57 }
  0x8c   :  { %v67_v18 = vmul.f32 %v65_v11, %v58_v17 }
  0x8e   :  { %v69_v19 = vsub.f32 %v178_v3, %v67_v18 }
  0x90   :  { %v71_v20 = vmul.f32 %v69_v19, %v69_v19 }
  0x92   :  { %v75_v21 = vsel %vm52_vm0, %v71_v20, 0.0 }
  0x93   :  { %76 = vadd.xlane.f32.xlu1 %v75_v21 }
  0xfe   :  { %v74_v24 = vpop.xlane.xlu1 %73 }
  0xff   :  { %v78_v25 = vmul.f32 %v74_v24, %v65_v11 }
 0x101   :  { %v80_v26 = vadd.f32 1e-05, %v78_v25 }
 0x103   :  { %190 = vrsqrt.f32 %v80_v26  ;;  %vm88_vm3 = vweird.f32 %v80_v26 }
 0x106   :  { %v77_v27 = vpop.xlane.xlu1 %76 }
 0x107   :  { %v79_v28 = vmul.f32 %v77_v27, %v65_v11 }
 0x109   :  { %v191_v29 = vpop.eup %190  ;;  %v81_v30 = vadd.f32 1e-05, %v79_v28 }
 0x10a   :  { %v83_v31 = vmul.f32 %v191_v29, %v80_v26  ;;  %vm89_vm2 = vweird.f32 %v191_v29 }
 0x10b   :  { %192 = vrsqrt.f32 %v81_v30  ;;  %vm90_vm5 = vmor %vm88_vm3, %vm89_vm2  ;;  %vm98_vm6 = vweird.f32 %v81_v30 }
 0x10c   :  { %v84_v32 = vmul.f32 %v191_v29, %v83_v31 }
 0x10e   :  { %v85_v33 = vmul.f32 0.5, %v84_v32 }
 0x110   :  { %v86_v35 = vsub.f32 1.5, %v85_v33 }
 0x111   :  { %v193_v34 = vpop.eup %192 }
 0x112   :  { %v93_v36 = vmul.f32 %v193_v34, %v81_v30  ;;  %v87_v38 = vmul.f32 %v191_v29, %v86_v35  ;;  %vm99_vm4 = vweird.f32 %v193_v34 }
 0x113   :  { %vm100_vm7 = vmor %vm98_vm6, %vm99_vm4 }
 0x114   :  { %v94_v37 = vmul.f32 %v193_v34, %v93_v36  ;;  %v91_v42 = vsel %vm90_vm5, %v191_v29, %v87_v38 }
 0x115   :  { %v102_v44 = vmul.f32 %v91_v42, %v68_v14 }
 0x116   :  { %v95_v39 = vmul.f32 0.5, %v94_v37 }
 0x118   :  { %v96_v40 = vsub.f32 1.5, %v95_v39 }
 0x11a   :  { %v97_v41 = vmul.f32 %v193_v34, %v96_v40 }
 0x11c   :  { %v101_v43 = vsel %vm100_vm7, %v193_v34, %v97_v41 }
 0x11d   :  { %v103_v45 = vmul.f32 %v101_v43, %v69_v19 }
 0x11f   :  { %v104_v46 = vpack.c.bf16 %v103_v45, %v102_v44 }
 0x121   :  { %172 = vmatmul.msk.bf16.vlgmr.msra.gmra.mxu0 %vm52_vm0, %v104_v46 }
 0x19e   :  { %v137_v48 = vpop.f32.mrf.mxu0 }
 0x19f   :  { %v138_v49 = vadd.f32 %v187_v47, %v137_v48 }
 0x1a1   :  { %142 = vst [vmem:[#allocation7] sm:$0xff] %v138_v49 }
 0x1a6   :  { %v139_v50 = vpop.f32.mrf.mxu0 }
 0x1a7   :  { %v140_v51 = vadd.f32 %v187_v47, %v139_v50 }
 0x1a9   :  { %143 = vst [vmem:[#allocation7 + $0x8] sm:$0xff] %v140_v51 }
 0x1aa   :  { %156 = dma.vmem_to_hbm [thread:$0]  %s149_s25, 256, %s151_s28, [#allocation4], %s278_s29, %s278_s29, %s279_s30  }
 0x1ab   :  { %270 = dma.done.wait [#allocation4], 256  }
 0x1ac   :  { %271 = vsyncadd [#allocation4], 4294967040 }
 0x1ad   :  { %161 = vsyncpa [#allocation3], 1 }
 0x1ae   :  { %162 = vsyncpa [#allocation6], 1 }
 0x1af   :  { %163 = vsyncpa [#allocation4], 1 }

</bundles_post_ra>
